<compile_context>
chip_gen: v5e
topology: v5e:2x2
jax: 0.10.0
libtpu: 0.0.40
codegen_flags: <defaults>
</compile_context>

<pallas_src>
import functools
import math

import jax
import jax.numpy as jnp
import numpy as np
from jax.experimental import pallas as pl
from jax.experimental.pallas import tpu as pltpu

HIDDEN = 4            # gating hidden size (Linear(2, 4))
NUM_EXPERTS = 2
IN_FEATURES = 2
LANES = 128           # lane width; batch maps onto this axis
MAX_TILE_ROWS = 4096  # (2, 4096, 128) f32 block = 4 MiB -> fits every gen's VMEM
DEFAULT_CHUNK_ROWS = 32   # (32, 128) f32 sub-chunk = 4 vregs per intermediate


def _round_up(n, m):
    return -(-n // m) * m


def _moe_kernel(x_ref,
                w_e1_ref, b_e1_ref,
                w_e2_ref, b_e2_ref,
                w_g1_ref, b_g1_ref,
                w_g2_ref, b_g2_ref,
                out_ref, *, tile_rows, chunk_rows):
    # Hoisted scalar weight reads (SMEM -> scalar regs), once per grid step.
    # Pre-differenced expert / gating weights so the vector path only computes
    # e2, de = e1 - e2 and the single logit difference d = l1 - l0.
    we2 = (w_e2_ref[0], w_e2_ref[1])
    be2 = b_e2_ref[0]
    dwe = (w_e1_ref[0] - w_e2_ref[0], w_e1_ref[1] - w_e2_ref[1])
    dbe = b_e1_ref[0] - b_e2_ref[0]
    wg1 = [(w_g1_ref[2 * j], w_g1_ref[2 * j + 1], b_g1_ref[j])
           for j in range(HIDDEN)]
    dwg2 = [w_g2_ref[HIDDEN + j] - w_g2_ref[j] for j in range(HIDDEN)]
    dbg2 = b_g2_ref[1] - b_g2_ref[0]

    n_chunks = tile_rows // chunk_rows

    # Process the (2, tile_rows, 128) block in lane-dense (chunk_rows, 128)
    # chunks so every intermediate stays resident in vregs (no spills).
    @pl.loop(0, n_chunks)
    def _(c):
        r0 = pl.multiple_of(c * chunk_rows, chunk_rows)   # sublane-aligned
        x0 = x_ref[0, pl.ds(r0, chunk_rows), :]           # (chunk, 128)
        x1 = x_ref[1, pl.ds(r0, chunk_rows), :]           # (chunk, 128)

        # Expert 2 and the expert difference e1 - e2 (pre-differenced weights).
        e2 = x0 * we2[0] + (x1 * we2[1] + be2)
        de = x0 * dwe[0] + (x1 * dwe[1] + dbe)

        # Gating hidden layer Linear(2, 4) + ReLU, unrolled on the VPU.
        h = [jnp.maximum(x0 * w0 + (x1 * w1 + b), 0.0) for (w0, w1, b) in wg1]

        # Gating logit difference d = l1 - l0 (Linear(4,2) collapsed to one row).
        d = h[0] * dwg2[0] + dbg2
        for j in range(1, HIDDEN):
            d = d + h[j] * dwg2[j]

        # 2-way softmax folded into a sigmoid of the logit difference:
        #   g0 = softmax([l0, l1])[0] = 1 / (1 + exp(l1 - l0)),  g1 = 1 - g0
        # exp args clamped so extreme logits never produce inf through the
        # approx reciprocal (which lands on the EUP, keeping the VPU free).
        g0 = pl.reciprocal(1.0 + jnp.exp(jnp.minimum(d, 30.0)), approx=True)
        mixed = e2 + g0 * de                              # == g0*e1 + g1*e2

        y = pl.reciprocal(1.0 + jnp.exp(jnp.minimum(-mixed, 30.0)), approx=True)
        out_ref[pl.ds(r0, chunk_rows), :] = y.astype(out_ref.dtype)


@functools.partial(jax.jit, static_argnames=("tile_rows", "chunk_rows"))
def moe_forward(x, params, *, tile_rows=None, chunk_rows=DEFAULT_CHUNK_ROWS):
    """x: (B, 2) float32.  Returns (B,) float32 — matches the PyTorch forward."""
    B = x.shape[0]

    # chunk_rows must be a multiple of 8 (sublane alignment of every pl.ds).
    chunk_rows = max(8, (int(chunk_rows) // 8) * 8)
    rows_min = -(-B // LANES)                             # cdiv(B, 128)
    if tile_rows is None:
        # Aim for ~8 grid steps (v7x megacore sharding + pipelining) while
        # keeping blocks big enough to amortize the ~0.35us per-step overhead.
        tile_rows = min(MAX_TILE_ROWS, max(chunk_rows, -(-rows_min // 8)))
    tile_rows = min(int(tile_rows), MAX_TILE_ROWS)
    tile_rows = _round_up(max(tile_rows, chunk_rows), chunk_rows)
    tile_rows = min(tile_rows, _round_up(rows_min, chunk_rows))

    n_tiles = -(-rows_min // tile_rows)
    rows_pad = n_tiles * tile_rows
    b_pad = rows_pad * LANES

    # Single fused relayout pass (pad + transpose fuse under jit): the batch
    # lands on the 128-wide lane axis, stacked as (2, rows_pad, 128) and fed
    # as ONE blocked input -> one input DMA per grid step.  Garbage tail rows
    # are computed (cheap, finite) and sliced off below.
    xp = x.astype(jnp.float32)
    if b_pad != B:
        xp = jnp.pad(xp, ((0, b_pad - B), (0, 0)))
    xs = xp.reshape(rows_pad, LANES, IN_FEATURES).transpose(2, 0, 1)

    smem = pl.BlockSpec(memory_space=pltpu.MemorySpace.SMEM)
    in_spec = pl.BlockSpec((IN_FEATURES, tile_rows, LANES), lambda i: (0, i, 0))
    out_spec = pl.BlockSpec((tile_rows, LANES), lambda i: (i, 0))

    kernel = functools.partial(_moe_kernel, tile_rows=tile_rows,
                               chunk_rows=chunk_rows)

    out = pl.pallas_call(
        kernel,
        out_shape=jax.ShapeDtypeStruct((rows_pad, LANES), jnp.float32),
        grid=(n_tiles,),
        in_specs=[
            in_spec,                   # stacked x (lane-dense, pipelined)
            smem, smem,                # expert1 W, b (flattened scalars)
            smem, smem,                # expert2 W, b
            smem, smem,                # gating linear1 W, b
            smem, smem,                # gating linear2 W, b
        ],
        out_specs=out_spec,
        compiler_params=pltpu.CompilerParams(
            dimension_semantics=("parallel",),          # megacore on v7x
            vmem_limit_bytes=32 * 1024 * 1024),         # large tiles on v5e too
        cost_estimate=pl.CostEstimate(
            flops=50 * b_pad,
            transcendentals=4 * b_pad,
            bytes_accessed=12 * b_pad),
    )(
        xs,
        params["w_e1"].reshape(-1), params["b_e1"].reshape(-1),
        params["w_e2"].reshape(-1), params["b_e2"].reshape(-1),
        params["w_g1"].reshape(-1), params["b_g1"].reshape(-1),
        params["w_g2"].reshape(-1), params["b_g2"].reshape(-1),
    )
    return out.reshape(b_pad)[:B]


def _linear_init(key, out_features, in_features):
    """PyTorch nn.Linear default init: U(-1/sqrt(fan_in), 1/sqrt(fan_in))."""
    kw, kb = jax.random.split(key)
    bound = 1.0 / math.sqrt(in_features)
    w = jax.random.uniform(kw, (out_features, in_features), jnp.float32,
                           minval=-bound, maxval=bound)
    b = jax.random.uniform(kb, (out_features,), jnp.float32,
                           minval=-bound, maxval=bound)
    return w, b


def make_params(key):
    k1, k2, k3, k4 = jax.random.split(key, 4)
    w_e1, b_e1 = _linear_init(k1, 1, IN_FEATURES)
    w_e2, b_e2 = _linear_init(k2, 1, IN_FEATURES)
    w_g1, b_g1 = _linear_init(k3, HIDDEN, IN_FEATURES)
    w_g2, b_g2 = _linear_init(k4, NUM_EXPERTS, HIDDEN)
    return dict(w_e1=w_e1, b_e1=b_e1, w_e2=w_e2, b_e2=b_e2,
                w_g1=w_g1, b_g1=b_g1, w_g2=w_g2, b_g2=b_g2)


def moe_reference(x, p):
    """Pure-JAX reference of the PyTorch forward."""
    e1 = x @ p["w_e1"].T + p["b_e1"]            # (B, 1)
    e2 = x @ p["w_e2"].T + p["b_e2"]            # (B, 1)
    h = jax.nn.relu(x @ p["w_g1"].T + p["b_g1"])
    g = jax.nn.softmax(h @ p["w_g2"].T + p["b_g2"], axis=-1)   # (B, 2)
    mixed = g[:, 0] * e1[:, 0] + g[:, 1] * e2[:, 0]
    return jax.nn.sigmoid(mixed)


def _check(y, y_ref, name):
    err = float(np.max(np.abs(np.asarray(y) - np.asarray(y_ref))))
    # approx reciprocal (EUP) gives ~1e-4-level error; sigmoid output in (0,1).
    assert err < 5e-3, f"{name}: max abs err {err}"


if __name__ == "__main__":
    key = jax.random.PRNGKey(0)
    k_params, k_data1, k_data2 = jax.random.split(key, 3)

    params = make_params(k_params)

    # Small case (batch=8): single tile, single chunk (auto config).
    x_small = jax.random.normal(k_data1, (8, IN_FEATURES), dtype=jnp.float32)
    y = jax.block_until_ready(moe_forward(x_small, params))
    y_ref = moe_reference(x_small, params)
    assert y.shape == (8,)
    _check(y, y_ref, "small")

    # Larger, non-multiple-of-128 batch with the default auto tiling path.
    x_big = jax.random.normal(k_data2, (3000, IN_FEATURES), dtype=jnp.float32)
    y_big = jax.block_until_ready(moe_forward(x_big, params))
    y_big_ref = moe_reference(x_big, params)
    assert y_big.shape == (3000,)
    _check(y_big, y_big_ref, "big-auto")

    # Same batch forced onto a multi-tile grid with multiple chunks per tile
    # (exercises the pl.loop body and the padded/sliced tail).
    y_big2 = jax.block_until_ready(
        moe_forward(x_big, params, tile_rows=16, chunk_rows=8))
    assert y_big2.shape == (3000,)
    _check(y_big2, y_big_ref, "big-tiled")

    print("KERNEL_OK")
</pallas_src>

<mosaic_0001>
module attributes {stable_mosaic.version = 11 : i64} {
  func.func @_moe_kernel(%arg0: i32, %arg1: memref<2x32x128xf32, #tpu.memory_space<vmem>>, %arg2: memref<2xf32, #tpu.memory_space<smem>>, %arg3: memref<1xf32, #tpu.memory_space<smem>>, %arg4: memref<2xf32, #tpu.memory_space<smem>>, %arg5: memref<1xf32, #tpu.memory_space<smem>>, %arg6: memref<8xf32, #tpu.memory_space<smem>>, %arg7: memref<4xf32, #tpu.memory_space<smem>>, %arg8: memref<8xf32, #tpu.memory_space<smem>>, %arg9: memref<2xf32, #tpu.memory_space<smem>>, %arg10: memref<32x128xf32, #tpu.memory_space<vmem>>) attributes {dimension_semantics = [#tpu.dimension_semantics<parallel>], iteration_bounds = array<i64: 1>, scalar_prefetch = 0 : i64, scratch_operands = 0 : i64, tpu.core_type = #tpu.core_type<tc>, window_params = [{transform_indices = @transform_0, window_bounds = array<i64: 2, 32, 128>}, {transform_indices = @transform_1, window_bounds = array<i64: 2>}, {transform_indices = @transform_2, window_bounds = array<i64: 1>}, {transform_indices = @transform_3, window_bounds = array<i64: 2>}, {transform_indices = @transform_4, window_bounds = array<i64: 1>}, {transform_indices = @transform_5, window_bounds = array<i64: 8>}, {transform_indices = @transform_6, window_bounds = array<i64: 4>}, {transform_indices = @transform_7, window_bounds = array<i64: 8>}, {transform_indices = @transform_8, window_bounds = array<i64: 2>}, {transform_indices = @transform_9, window_bounds = array<i64: 32, 128>}]} {
    %c0 = arith.constant 0 : index
    %0 = memref.load %arg4[%c0] : memref<2xf32, #tpu.memory_space<smem>>
    %c1 = arith.constant 1 : index
    %1 = memref.load %arg4[%c1] : memref<2xf32, #tpu.memory_space<smem>>
    %c0_0 = arith.constant 0 : index
    %2 = memref.load %arg5[%c0_0] : memref<1xf32, #tpu.memory_space<smem>>
    %c0_1 = arith.constant 0 : index
    %3 = memref.load %arg2[%c0_1] : memref<2xf32, #tpu.memory_space<smem>>
    %c0_2 = arith.constant 0 : index
    %4 = memref.load %arg4[%c0_2] : memref<2xf32, #tpu.memory_space<smem>>
    %5 = arith.subf %3, %4 : f32
    %c1_3 = arith.constant 1 : index
    %6 = memref.load %arg2[%c1_3] : memref<2xf32, #tpu.memory_space<smem>>
    %c1_4 = arith.constant 1 : index
    %7 = memref.load %arg4[%c1_4] : memref<2xf32, #tpu.memory_space<smem>>
    %8 = arith.subf %6, %7 : f32
    %c0_5 = arith.constant 0 : index
    %9 = memref.load %arg3[%c0_5] : memref<1xf32, #tpu.memory_space<smem>>
    %c0_6 = arith.constant 0 : index
    %10 = memref.load %arg5[%c0_6] : memref<1xf32, #tpu.memory_space<smem>>
    %11 = arith.subf %9, %10 : f32
    %c0_7 = arith.constant 0 : index
    %12 = memref.load %arg6[%c0_7] : memref<8xf32, #tpu.memory_space<smem>>
    %c1_8 = arith.constant 1 : index
    %13 = memref.load %arg6[%c1_8] : memref<8xf32, #tpu.memory_space<smem>>
    %c0_9 = arith.constant 0 : index
    %14 = memref.load %arg7[%c0_9] : memref<4xf32, #tpu.memory_space<smem>>
    %c2 = arith.constant 2 : index
    %15 = memref.load %arg6[%c2] : memref<8xf32, #tpu.memory_space<smem>>
    %c3 = arith.constant 3 : index
    %16 = memref.load %arg6[%c3] : memref<8xf32, #tpu.memory_space<smem>>
    %c1_10 = arith.constant 1 : index
    %17 = memref.load %arg7[%c1_10] : memref<4xf32, #tpu.memory_space<smem>>
    %c4 = arith.constant 4 : index
    %18 = memref.load %arg6[%c4] : memref<8xf32, #tpu.memory_space<smem>>
    %c5 = arith.constant 5 : index
    %19 = memref.load %arg6[%c5] : memref<8xf32, #tpu.memory_space<smem>>
    %c2_11 = arith.constant 2 : index
    %20 = memref.load %arg7[%c2_11] : memref<4xf32, #tpu.memory_space<smem>>
    %c6 = arith.constant 6 : index
    %21 = memref.load %arg6[%c6] : memref<8xf32, #tpu.memory_space<smem>>
    %c7 = arith.constant 7 : index
    %22 = memref.load %arg6[%c7] : memref<8xf32, #tpu.memory_space<smem>>
    %c3_12 = arith.constant 3 : index
    %23 = memref.load %arg7[%c3_12] : memref<4xf32, #tpu.memory_space<smem>>
    %c4_13 = arith.constant 4 : index
    %24 = memref.load %arg8[%c4_13] : memref<8xf32, #tpu.memory_space<smem>>
    %c0_14 = arith.constant 0 : index
    %25 = memref.load %arg8[%c0_14] : memref<8xf32, #tpu.memory_space<smem>>
    %26 = arith.subf %24, %25 : f32
    %c5_15 = arith.constant 5 : index
    %27 = memref.load %arg8[%c5_15] : memref<8xf32, #tpu.memory_space<smem>>
    %c1_16 = arith.constant 1 : index
    %28 = memref.load %arg8[%c1_16] : memref<8xf32, #tpu.memory_space<smem>>
    %29 = arith.subf %27, %28 : f32
    %c6_17 = arith.constant 6 : index
    %30 = memref.load %arg8[%c6_17] : memref<8xf32, #tpu.memory_space<smem>>
    %c2_18 = arith.constant 2 : index
    %31 = memref.load %arg8[%c2_18] : memref<8xf32, #tpu.memory_space<smem>>
    %32 = arith.subf %30, %31 : f32
    %c7_19 = arith.constant 7 : index
    %33 = memref.load %arg8[%c7_19] : memref<8xf32, #tpu.memory_space<smem>>
    %c3_20 = arith.constant 3 : index
    %34 = memref.load %arg8[%c3_20] : memref<8xf32, #tpu.memory_space<smem>>
    %35 = arith.subf %33, %34 : f32
    %c1_21 = arith.constant 1 : index
    %36 = memref.load %arg9[%c1_21] : memref<2xf32, #tpu.memory_space<smem>>
    %c0_22 = arith.constant 0 : index
    %37 = memref.load %arg9[%c0_22] : memref<2xf32, #tpu.memory_space<smem>>
    %38 = arith.subf %36, %37 : f32
    %c0_i32 = arith.constant 0 : i32
    %c1_i32 = arith.constant 1 : i32
    %39 = arith.muli %c0_i32, %c1_i32 : i32
    %c0_i32_23 = arith.constant 0 : i32
    %40 = arith.addi %c0_i32_23, %39 : i32
    %c32_i32 = arith.constant 32 : i32
    %41 = arith.muli %40, %c32_i32 : i32
    %42 = tpu.assume_multiple %41, 32 : i32
    %c0_24 = arith.constant 0 : index
    %43 = arith.index_cast %42 : i32 to index
    %c0_25 = arith.constant 0 : index
    %44 = vector.load %arg1[%c0_24, %43, %c0_25] : memref<2x32x128xf32, #tpu.memory_space<vmem>>, vector<1x32x128xf32>
    %45 = vector.shape_cast %44 : vector<1x32x128xf32> to vector<32x128xf32>
    %c1_26 = arith.constant 1 : index
    %46 = arith.index_cast %42 : i32 to index
    %c0_27 = arith.constant 0 : index
    %47 = vector.load %arg1[%c1_26, %46, %c0_27] : memref<2x32x128xf32, #tpu.memory_space<vmem>>, vector<1x32x128xf32>
    %48 = vector.shape_cast %47 : vector<1x32x128xf32> to vector<32x128xf32>
    %49 = vector.broadcast %0 : f32 to vector<32x128xf32>
    %50 = arith.mulf %45, %49 : vector<32x128xf32>
    %51 = vector.broadcast %1 : f32 to vector<32x128xf32>
    %52 = arith.mulf %48, %51 : vector<32x128xf32>
    %53 = vector.broadcast %2 : f32 to vector<32x128xf32>
    %54 = arith.addf %52, %53 : vector<32x128xf32>
    %55 = arith.addf %50, %54 : vector<32x128xf32>
    %56 = vector.broadcast %5 : f32 to vector<32x128xf32>
    %57 = arith.mulf %45, %56 : vector<32x128xf32>
    %58 = vector.broadcast %8 : f32 to vector<32x128xf32>
    %59 = arith.mulf %48, %58 : vector<32x128xf32>
    %60 = vector.broadcast %11 : f32 to vector<32x128xf32>
    %61 = arith.addf %59, %60 : vector<32x128xf32>
    %62 = arith.addf %57, %61 : vector<32x128xf32>
    %63 = vector.broadcast %12 : f32 to vector<32x128xf32>
    %64 = arith.mulf %45, %63 : vector<32x128xf32>
    %65 = vector.broadcast %13 : f32 to vector<32x128xf32>
    %66 = arith.mulf %48, %65 : vector<32x128xf32>
    %67 = vector.broadcast %14 : f32 to vector<32x128xf32>
    %68 = arith.addf %66, %67 : vector<32x128xf32>
    %69 = arith.addf %64, %68 : vector<32x128xf32>
    %cst = arith.constant 0.000000e+00 : f32
    %70 = vector.broadcast %cst : f32 to vector<32x128xf32>
    %71 = arith.maximumf %69, %70 : vector<32x128xf32>
    %72 = vector.broadcast %15 : f32 to vector<32x128xf32>
    %73 = arith.mulf %45, %72 : vector<32x128xf32>
    %74 = vector.broadcast %16 : f32 to vector<32x128xf32>
    %75 = arith.mulf %48, %74 : vector<32x128xf32>
    %76 = vector.broadcast %17 : f32 to vector<32x128xf32>
    %77 = arith.addf %75, %76 : vector<32x128xf32>
    %78 = arith.addf %73, %77 : vector<32x128xf32>
    %cst_28 = arith.constant 0.000000e+00 : f32
    %79 = vector.broadcast %cst_28 : f32 to vector<32x128xf32>
    %80 = arith.maximumf %78, %79 : vector<32x128xf32>
    %81 = vector.broadcast %18 : f32 to vector<32x128xf32>
    %82 = arith.mulf %45, %81 : vector<32x128xf32>
    %83 = vector.broadcast %19 : f32 to vector<32x128xf32>
    %84 = arith.mulf %48, %83 : vector<32x128xf32>
    %85 = vector.broadcast %20 : f32 to vector<32x128xf32>
    %86 = arith.addf %84, %85 : vector<32x128xf32>
    %87 = arith.addf %82, %86 : vector<32x128xf32>
    %cst_29 = arith.constant 0.000000e+00 : f32
    %88 = vector.broadcast %cst_29 : f32 to vector<32x128xf32>
    %89 = arith.maximumf %87, %88 : vector<32x128xf32>
    %90 = vector.broadcast %21 : f32 to vector<32x128xf32>
    %91 = arith.mulf %45, %90 : vector<32x128xf32>
    %92 = vector.broadcast %22 : f32 to vector<32x128xf32>
    %93 = arith.mulf %48, %92 : vector<32x128xf32>
    %94 = vector.broadcast %23 : f32 to vector<32x128xf32>
    %95 = arith.addf %93, %94 : vector<32x128xf32>
    %96 = arith.addf %91, %95 : vector<32x128xf32>
    %cst_30 = arith.constant 0.000000e+00 : f32
    %97 = vector.broadcast %cst_30 : f32 to vector<32x128xf32>
    %98 = arith.maximumf %96, %97 : vector<32x128xf32>
    %99 = vector.broadcast %26 : f32 to vector<32x128xf32>
    %100 = arith.mulf %71, %99 : vector<32x128xf32>
    %101 = vector.broadcast %38 : f32 to vector<32x128xf32>
    %102 = arith.addf %100, %101 : vector<32x128xf32>
    %103 = vector.broadcast %29 : f32 to vector<32x128xf32>
    %104 = arith.mulf %80, %103 : vector<32x128xf32>
    %105 = arith.addf %102, %104 : vector<32x128xf32>
    %106 = vector.broadcast %32 : f32 to vector<32x128xf32>
    %107 = arith.mulf %89, %106 : vector<32x128xf32>
    %108 = arith.addf %105, %107 : vector<32x128xf32>
    %109 = vector.broadcast %35 : f32 to vector<32x128xf32>
    %110 = arith.mulf %98, %109 : vector<32x128xf32>
    %111 = arith.addf %108, %110 : vector<32x128xf32>
    %cst_31 = arith.constant 3.000000e+01 : f32
    %112 = vector.broadcast %cst_31 : f32 to vector<32x128xf32>
    %113 = arith.minimumf %111, %112 : vector<32x128xf32>
    %114 = math.exp %113 : vector<32x128xf32>
    %cst_32 = arith.constant 1.000000e+00 : f32
    %115 = vector.broadcast %cst_32 : f32 to vector<32x128xf32>
    %116 = arith.addf %115, %114 : vector<32x128xf32>
    %117 = tpu.reciprocal %116 {approx = true} : vector<32x128xf32> -> vector<32x128xf32>
    %118 = arith.mulf %117, %62 : vector<32x128xf32>
    %119 = arith.addf %55, %118 : vector<32x128xf32>
    %cst_33 = arith.constant 0.000000e+00 : f32
    %120 = vector.broadcast %cst_33 : f32 to vector<32x128xf32>
    %121 = arith.subf %120, %119 : vector<32x128xf32>
    %cst_34 = arith.constant 3.000000e+01 : f32
    %122 = vector.broadcast %cst_34 : f32 to vector<32x128xf32>
    %123 = arith.minimumf %121, %122 : vector<32x128xf32>
    %124 = math.exp %123 : vector<32x128xf32>
    %cst_35 = arith.constant 1.000000e+00 : f32
    %125 = vector.broadcast %cst_35 : f32 to vector<32x128xf32>
    %126 = arith.addf %125, %124 : vector<32x128xf32>
    %127 = tpu.reciprocal %126 {approx = true} : vector<32x128xf32> -> vector<32x128xf32>
    %128 = arith.index_cast %42 : i32 to index
    %c0_36 = arith.constant 0 : index
    %129 = vector.load %arg10[%128, %c0_36] : memref<32x128xf32, #tpu.memory_space<vmem>>, vector<32x128xf32>
    tpu.vector_store %arg10[%128, %c0_36], %127 {strides = array<i32>} : memref<32x128xf32, #tpu.memory_space<vmem>>, vector<32x128xf32>,
    %c1_i32_37 = arith.constant 1 : i32
    return
  }
  func.func @transform_0(%arg0: i32) -> (i32, i32, i32) {
    %c0_i32 = arith.constant 0 : i32
    %c0_i32_0 = arith.constant 0 : i32
    %c0_i32_1 = arith.constant 0 : i32
    return %c0_i32, %arg0, %c0_i32_0 : i32, i32, i32
  }
  func.func @transform_1(%arg0: i32) -> i32 {
    %c0_i32 = arith.constant 0 : i32
    %c0_i32_0 = arith.constant 0 : i32
    return %c0_i32 : i32
  }
  func.func @transform_2(%arg0: i32) -> i32 {
    %c0_i32 = arith.constant 0 : i32
    %c0_i32_0 = arith.constant 0 : i32
    return %c0_i32 : i32
  }
  func.func @transform_3(%arg0: i32) -> i32 {
    %c0_i32 = arith.constant 0 : i32
    %c0_i32_0 = arith.constant 0 : i32
    return %c0_i32 : i32
  }
  func.func @transform_4(%arg0: i32) -> i32 {
    %c0_i32 = arith.constant 0 : i32
    %c0_i32_0 = arith.constant 0 : i32
    return %c0_i32 : i32
  }
  func.func @transform_5(%arg0: i32) -> i32 {
    %c0_i32 = arith.constant 0 : i32
    %c0_i32_0 = arith.constant 0 : i32
    return %c0_i32 : i32
  }
  func.func @transform_6(%arg0: i32) -> i32 {
    %c0_i32 = arith.constant 0 : i32
    %c0_i32_0 = arith.constant 0 : i32
    return %c0_i32 : i32
  }
  func.func @transform_7(%arg0: i32) -> i32 {
    %c0_i32 = arith.constant 0 : i32
    %c0_i32_0 = arith.constant 0 : i32
    return %c0_i32 : i32
  }
  func.func @transform_8(%arg0: i32) -> i32 {
    %c0_i32 = arith.constant 0 : i32
    %c0_i32_0 = arith.constant 0 : i32
    return %c0_i32 : i32
  }
  func.func @transform_9(%arg0: i32) -> (i32, i32) {
    %c0_i32 = arith.constant 0 : i32
    %c0_i32_0 = arith.constant 0 : i32
    return %arg0, %c0_i32 : i32, i32
  }
}

</mosaic_0001>

<bundles_post_ra>
// kernel: moe_forward.1
= control target key start
LH: loop header
LB: loop body
LE: loop exit
PB: predicated region body
PF: predicated region fallthrough
CT: control target
= control target key end

     0   :  { %16 = vsyncpa [#allocation5], 0  ;;  %s805_s0 = inlined_call_operand.vmem [shape: f32[2,32,128], index: 0, kind: input, shape index: {}]   ;;  %s806_s1 = inlined_call_operand.vmem [shape: f32[2], index: 1, kind: input, shape index: {}]   ;;  %s807_s2 = inlined_call_operand.<no memory space> [shape: f32[1], index: 2, kind: input, shape index: {}]   ;;  %s808_s3 = inlined_call_operand.vmem [shape: f32[2], index: 3, kind: input, shape index: {}]   ;;  %s809_s4 = inlined_call_operand.<no memory space> [shape: f32[1], index: 4, kind: input, shape index: {}]   ;;  %s810_s5 = inlined_call_operand.vmem [shape: f32[8], index: 5, kind: input, shape index: {}]   ;;  %s811_s6 = inlined_call_operand.vmem [shape: f32[4], index: 6, kind: input, shape index: {}]   ;;  %s812_s7 = inlined_call_operand.vmem [shape: f32[8], index: 7, kind: input, shape index: {}]   ;;  %s813_s8 = inlined_call_operand.vmem [shape: f32[2], index: 8, kind: input, shape index: {}]   ;;  %s814_s9 = inlined_call_operand.vmem [shape: f32[32,128], index: 9, kind: output, shape index: {}]  }
   0x1   :  { %17 = vsyncpa [#allocation7], 0 }
   0x2   :  { %18 = vsyncpa [#allocation10], 0  ;;  %s38_s11 = sshll.u32 %s808_s3, 4  ;;  %s39_s11 = int_to_ptr.vmem [resolvable:$true] %s38_s11 }
   0x3   :  { %19 = vsyncpa [#allocation13], 0  ;;  %s58_s14 = sshll.u32 %s811_s6, 4  ;;  %s525_s15 = smov [#allocation6]   ;;  %s59_s14 = int_to_ptr.vmem [resolvable:$true] %s58_s14 }
   0x4   :  { %41 = dma.vmem_to_smem %s39_s11, 16, %s525_s15, [#allocation7]  }
   0x5   :  { %s526_s16 = smov [#allocation9]   ;;  %s27_s19 = sshll.u32 %s806_s1, 4  ;;  %s28_s19 = int_to_ptr.vmem [resolvable:$true] %s27_s19 }
   0x6   :  { %61 = dma.vmem_to_smem %s59_s14, 16, %s526_s16, [#allocation10]  }
   0x7   :  { %s49_s3 = sshll.u32 %s810_s5, 4  ;;  %s527_s22 = smov [#allocation4]   ;;  %s50_s3 = int_to_ptr.vmem [resolvable:$true] %s49_s3 }
   0x8   :  { %30 = dma.vmem_to_smem %s28_s19, 16, %s527_s22, [#allocation5]  }
   0x9   :  { %s528_s23 = smov [#allocation8]   ;;  %s67_s25 = sshll.u32 %s812_s7, 4  ;;  %s68_s25 = int_to_ptr.vmem [resolvable:$true] %s67_s25 }
   0xa   :  { %52 = dma.vmem_to_smem %s50_s3, 16, %s528_s23, [#allocation7]  }
   0xb   :  { %s76_s28 = sshll.u32 %s813_s8, 4  ;;  %s529_s1 = smov [#allocation11]   ;;  %s77_s28 = int_to_ptr.vmem [resolvable:$true] %s76_s28 }
   0xc   :  { %70 = dma.vmem_to_smem %s68_s25, 16, %s529_s1, [#allocation10]  }
   0xd   :  { %s530_s29 = smov [#allocation12]  }
   0xe   :  { %79 = dma.vmem_to_smem %s77_s28, 16, %s530_s29, [#allocation13]  }
   0xf   :  { %517 = dma.done.wait [#allocation5], 16  }
  0x10   :  { %518 = vsyncadd [#allocation5], 4294967280 }
  0x11   :  { %519 = dma.done.wait [#allocation7], 32  }
  0x12   :  { %520 = vsyncadd [#allocation7], 4294967264 }
  0x13   :  { %521 = dma.done.wait [#allocation10], 32  }
  0x14   :  { %522 = vsyncadd [#allocation10], 4294967264 }
  0x15   :  { %523 = dma.done.wait [#allocation13], 16  }
  0x16   :  { %524 = vsyncadd [#allocation13], 4294967280 }
  0x17   :  { %104 = sfence }
  0x18   :  { %s114_s5 = sld [smem:[#allocation8]]  ;;  %v610_v0 = vld [vmem:[%s805_s0] sm:$0xff]  ;;  %v615_v1 = vld [vmem:[%s805_s0 + $0x8] sm:$0xff]  ;;  %v620_v2 = vld [vmem:[%s805_s0 + $0x10] sm:$0xff] }
  0x19   :  { %s385_s7 = sld [smem:[#allocation8 + $0x1]]  ;;  %v625_v3 = vld [vmem:[%s805_s0 + $0x18] sm:$0xff]  ;;  %v630_v4 = vld [vmem:[%s805_s0 + $0x20] sm:$0xff]  ;;  %v635_v6 = vld [vmem:[%s805_s0 + $0x28] sm:$0xff] }
  0x1a   :  { %s116_s30 = sld [smem:[#allocation9]]  ;;  %v640_v7 = vld [vmem:[%s805_s0 + $0x30] sm:$0xff]  ;;  %v645_v8 = vld [vmem:[%s805_s0 + $0x38] sm:$0xff] }
  0x1b   :  { %s599_s10 = sld [smem:[#allocation8 + $0x2]] }
  0x1c   :  { %s601_s8 = sld [smem:[#allocation8 + $0x3]] }
  0x1d   :  { %s603_s11 = sld [smem:[#allocation9 + $0x1]] }
  0x1e   :  { %s605_s12 = sld [smem:[#allocation8 + $0x4]]  ;;  %v189_v5 = vstv %s114_s5 }
  0x1f   :  { %v194_v9 = vstv %s385_s7  ;;  %s647_s27 = sld [smem:[#allocation8 + $0x5]]  ;;  %v190_v11 = vmul.f32 %v189_v5, %v610_v0  ;;  %v191_v12 = vmul.f32 %v189_v5, %v615_v1  ;;  %v192_v13 = vmul.f32 %v189_v5, %v620_v2 }
  0x20   :  { %v199_v10 = vstv %s116_s30  ;;  %s649_s28 = sld [smem:[#allocation9 + $0x2]]  ;;  %v193_v14 = vmul.f32 %v189_v5, %v625_v3  ;;  %v195_v15 = vmul.f32 %v630_v4, %v194_v9  ;;  %v196_v16 = vmul.f32 %v635_v6, %v194_v9 }
  0x21   :  { %s655_s0 = sld [smem:[#allocation8 + $0x6]]  ;;  %v197_v17 = vmul.f32 %v640_v7, %v194_v9  ;;  %v198_v18 = vmul.f32 %v645_v8, %v194_v9  ;;  %v212_v23 = vstv %s599_s10 }
  0x22   :  { %s661_s1 = sld [smem:[#allocation8 + $0x7]]  ;;  %v200_v19 = vadd.f32 %v199_v10, %v195_v15  ;;  %v201_v20 = vadd.f32 %v199_v10, %v196_v16  ;;  %v217_v24 = vstv %s601_s8  ;;  %v213_v31 = vmul.f32 %v212_v23, %v610_v0 }
  0x23   :  { %s663_s29 = sld [smem:[#allocation11 + $0x4]]  ;;  %v202_v21 = vadd.f32 %v199_v10, %v197_v17  ;;  %v203_v22 = vadd.f32 %v199_v10, %v198_v18  ;;  %v222_v25 = vstv %s603_s11  ;;  %v214_v32 = vmul.f32 %v212_v23, %v615_v1 }
  0x24   :  { %s665_s5 = sld [smem:[#allocation11]]  ;;  %v235_v26 = vstv %s605_s12  ;;  %v673_v27 = vadd.f32 %v200_v19, %v190_v11  ;;  %v675_v28 = vadd.f32 %v201_v20, %v191_v12  ;;  %v215_v33 = vmul.f32 %v212_v23, %v620_v2 }
  0x25   :  { %s671_s7 = sld [smem:[#allocation11 + $0x5]]  ;;  %v677_v29 = vadd.f32 %v202_v21, %v192_v13  ;;  %v679_v30 = vadd.f32 %v203_v22, %v193_v14  ;;  %v216_v34 = vmul.f32 %v212_v23, %v625_v3  ;;  %v218_v39 = vmul.f32 %v630_v4, %v217_v24 }
  0x26   :  { %s681_s30 = sld [smem:[#allocation11 + $0x1]]  ;;  %v208_v35 = vmax.f32 %v673_v27, 0.0  ;;  %v209_v36 = vmax.f32 %v675_v28, 0.0  ;;  %v219_v40 = vmul.f32 %v635_v6, %v217_v24  ;;  %v220_v41 = vmul.f32 %v640_v7, %v217_v24 }
  0x27   :  { %s687_s10 = sld [smem:[#allocation11 + $0x6]]  ;;  %v210_v37 = vmax.f32 %v677_v29, 0.0  ;;  %v211_v38 = vmax.f32 %v679_v30, 0.0  ;;  %v221_v42 = vmul.f32 %v645_v8, %v217_v24  ;;  %v236_v43 = vmul.f32 %v235_v26, %v610_v0 }
  0x28   :  { %s693_s8 = sld [smem:[#allocation11 + $0x2]]  ;;  %v237_v44 = vmul.f32 %v235_v26, %v615_v1  ;;  %v238_v45 = vmul.f32 %v235_v26, %v620_v2  ;;  %v239_v46 = vmul.f32 %v235_v26, %v625_v3  ;;  %v223_v47 = vadd.f32 %v222_v25, %v218_v39 }
  0x29   :  { %s703_s11 = sld [smem:[#allocation9 + $0x3]]  ;;  %v224_v48 = vadd.f32 %v222_v25, %v219_v40  ;;  %v225_v49 = vadd.f32 %v222_v25, %v220_v41  ;;  %v226_v50 = vadd.f32 %v222_v25, %v221_v42  ;;  %v240_v51 = vstv %s647_s27 }
  0x2a   :  { %s705_s12 = sld [smem:[#allocation11 + $0x7]]  ;;  %v245_v52 = vstv %s649_s28  ;;  %v258_v53 = vstv %s655_s0  ;;  %v263_v54 = vstv %s661_s1  ;;  %v227_v55 = vadd.f32 %v223_v47, %v213_v31 }
  0x2b   :  { %s711_s13 = sld [smem:[#allocation12 + $0x1]]  ;;  %v228_v56 = vadd.f32 %v224_v48, %v214_v32  ;;  %v229_v57 = vadd.f32 %v225_v49, %v215_v33  ;;  %v713_v58 = vadd.f32 %v226_v50, %v216_v34  ;;  %v241_v59 = vmul.f32 %v630_v4, %v240_v51 }
  0x2c   :  { %s128_s14 = ssub.f32 %s663_s29, %s665_s5  ;;  %v242_v60 = vmul.f32 %v635_v6, %v240_v51  ;;  %v243_v61 = vmul.f32 %v640_v7, %v240_v51  ;;  %v244_v62 = vmul.f32 %v645_v8, %v240_v51  ;;  %v231_v63 = vmax.f32 %v227_v55, 0.0 }
  0x2d   :  { %s721_s15 = sld [smem:[#allocation12]]  ;;  %v232_v5 = vmax.f32 %v228_v56, 0.0  ;;  %v233_v9 = vmax.f32 %v229_v57, 0.0  ;;  %v234_v10 = vmax.f32 %v713_v58, 0.0  ;;  %v246_v11 = vadd.f32 %v245_v52, %v241_v59 }
  0x2e   :  { %s131_s16 = ssub.f32 %s671_s7, %s681_s30  ;;  %v247_v12 = vadd.f32 %v245_v52, %v242_v60  ;;  %v248_v13 = vadd.f32 %v245_v52, %v243_v61  ;;  %v249_v14 = vadd.f32 %v245_v52, %v244_v62  ;;  %v259_v15 = vmul.f32 %v258_v53, %v610_v0 }
  0x2f   :  { %s134_s17 = ssub.f32 %s687_s10, %s693_s8  ;;  %v260_v16 = vmul.f32 %v258_v53, %v615_v1  ;;  %v261_v17 = vmul.f32 %v258_v53, %v620_v2  ;;  %v262_v18 = vmul.f32 %v258_v53, %v625_v3  ;;  %v250_v19 = vadd.f32 %v246_v11, %v236_v43 }
  0x30   :  { %s732_s18 = sld [smem:[#allocation11 + $0x3]]  ;;  %v251_v20 = vadd.f32 %v247_v12, %v237_v44  ;;  %v252_v21 = vadd.f32 %v248_v13, %v238_v45  ;;  %v253_v22 = vadd.f32 %v249_v14, %v239_v46  ;;  %v264_v23 = vmul.f32 %v630_v4, %v263_v54 }
  0x31   :  { %v265_v24 = vmul.f32 %v635_v6, %v263_v54  ;;  %v266_v25 = vmul.f32 %v640_v7, %v263_v54  ;;  %v267_v26 = vmul.f32 %v645_v8, %v263_v54  ;;  %v254_v31 = vmax.f32 %v250_v19, 0.0  ;;  %s754_s21 = sld [smem:[#allocation6 + $0x1]] }
  0x32   :  { %v255_v32 = vmax.f32 %v251_v20, 0.0  ;;  %v256_v33 = vmax.f32 %v252_v21, 0.0  ;;  %v257_v34 = vmax.f32 %v253_v22, 0.0  ;;  %v268_v39 = vstv %s703_s11  ;;  %s756_s3 = sld [smem:[#allocation4 + $0x1]] }
  0x33   :  { %s140_s19 = ssub.f32 %s711_s13, %s721_s15  ;;  %v281_v40 = vstv %s128_s14  ;;  %v291_v41 = vstv %s131_s16  ;;  %v300_v42 = vstv %s134_s17  ;;  %v269_v43 = vadd.f32 %v268_v39, %v264_v23 }
  0x34   :  { %v270_v44 = vadd.f32 %v268_v39, %v265_v24  ;;  %v271_v45 = vadd.f32 %v268_v39, %v266_v25  ;;  %v272_v46 = vadd.f32 %v268_v39, %v267_v26  ;;  %v282_v47 = vmul.f32 %v281_v40, %v208_v35  ;;  %s758_s22 = sld [smem:[#allocation6]] }
  0x35   :  { %v283_v48 = vmul.f32 %v281_v40, %v209_v36  ;;  %v284_v49 = vmul.f32 %v281_v40, %v210_v37  ;;  %v285_v50 = vmul.f32 %v281_v40, %v211_v38  ;;  %v273_v51 = vadd.f32 %v269_v43, %v259_v15  ;;  %s760_s23 = sld [smem:[#allocation4]] }
  0x36   :  { %v274_v52 = vadd.f32 %v270_v44, %v260_v16  ;;  %v275_v53 = vadd.f32 %v271_v45, %v261_v17  ;;  %v276_v54 = vadd.f32 %v272_v46, %v262_v18  ;;  %v286_v55 = vstv %s140_s19  ;;  %s137_s20 = ssub.f32 %s705_s12, %s732_s18 }
  0x37   :  { %v292_v56 = vmul.f32 %v291_v41, %v231_v63  ;;  %v293_v57 = vmul.f32 %v291_v41, %v232_v5  ;;  %v294_v58 = vmul.f32 %v291_v41, %v233_v9  ;;  %v277_v27 = vmax.f32 %v273_v51, 0.0  ;;  %s113_s28 = ssub.f32 %s807_s2, %s809_s4 }
  0x38   :  { %v278_v35 = vmax.f32 %v274_v52, 0.0  ;;  %v279_v59 = vmax.f32 %v275_v53, 0.0  ;;  %v280_v28 = vmax.f32 %v276_v54, 0.0  ;;  %v287_v29 = vadd.f32 %v286_v55, %v282_v47  ;;  %s111_s6 = ssub.f32 %s756_s3, %s754_s21 }
  0x39   :  { %v288_v36 = vadd.f32 %v286_v55, %v283_v48  ;;  %v289_v37 = vadd.f32 %v286_v55, %v284_v49  ;;  %v290_v30 = vadd.f32 %v286_v55, %v285_v50  ;;  %v295_v38 = vmul.f32 %v291_v41, %v234_v10 }
  0x3a   :  { %v301_v60 = vmul.f32 %v300_v42, %v254_v31  ;;  %v302_v61 = vmul.f32 %v300_v42, %v255_v32  ;;  %v303_v62 = vmul.f32 %v300_v42, %v256_v33  ;;  %v296_v63 = vadd.f32 %v292_v56, %v287_v29 }
  0x3b   :  { %v297_v5 = vadd.f32 %v293_v57, %v288_v36  ;;  %v298_v9 = vadd.f32 %v294_v58, %v289_v37  ;;  %v304_v11 = vmul.f32 %v300_v42, %v257_v34  ;;  %v299_v12 = vadd.f32 %v295_v38, %v290_v30  ;;  %s109_s0 = ssub.f32 %s760_s23, %s758_s22 }
  0x3c   :  { %v309_v13 = vstv %s137_s20  ;;  %v305_v14 = vadd.f32 %v301_v60, %v296_v63  ;;  %v156_v41 = vstv %s754_s21  ;;  %v175_v42 = vstv %s111_s6 }
  0x3d   :  { %v306_v15 = vadd.f32 %v302_v61, %v297_v5  ;;  %v307_v16 = vadd.f32 %v303_v62, %v298_v9  ;;  %v310_v17 = vmul.f32 %v309_v13, %v277_v27  ;;  %v308_v10 = vadd.f32 %v304_v11, %v299_v12 }
  0x3e   :  { %v311_v18 = vmul.f32 %v309_v13, %v278_v35  ;;  %v312_v19 = vmul.f32 %v309_v13, %v279_v59  ;;  %v313_v20 = vmul.f32 %v309_v13, %v280_v28  ;;  %v151_v43 = vstv %s758_s22 }
  0x3f   :  { %v314_v21 = vadd.f32 %v310_v17, %v305_v14  ;;  %v157_v44 = vmul.f32 %v630_v4, %v156_v41  ;;  %v176_v45 = vmul.f32 %v630_v4, %v175_v42  ;;  %v161_v46 = vstv %s809_s4 }
  0x40   :  { %v315_v22 = vadd.f32 %v311_v18, %v306_v15  ;;  %v316_v23 = vadd.f32 %v312_v19, %v307_v16  ;;  %v317_v24 = vadd.f32 %v313_v20, %v308_v10  ;;  %v170_v47 = vstv %s109_s0 }
  0x41   :  { %v318_v25 = vmin.f32 %v314_v21, 30.0  ;;  %v177_v48 = vmul.f32 %v635_v6, %v175_v42  ;;  %v180_v49 = vstv %s113_s28  ;;  %v152_v51 = vmul.f32 %v151_v43, %v610_v0 }
  0x42   :  { %v319_v26 = vmin.f32 %v315_v22, 30.0  ;;  %v320_v31 = vmin.f32 %v316_v23, 30.0  ;;  %v321_v32 = vmin.f32 %v317_v24, 30.0  ;;  %v153_v52 = vmul.f32 %v151_v43, %v615_v1 }
  0x43   :  { %v322_v33 = vmul.f32 1.442695, %v318_v25  ;;  %v158_v53 = vmul.f32 %v635_v6, %v156_v41  ;;  %v178_v54 = vmul.f32 %v640_v7, %v175_v42  ;;  %v159_v4 = vmul.f32 %v640_v7, %v156_v41 }
  0x44   :  { %v324_v34 = vmul.f32 1.442695, %v319_v26  ;;  %v326_v39 = vmul.f32 1.442695, %v320_v31  ;;  %v328_v40 = vmul.f32 1.442695, %v321_v32  ;;  %v160_v56 = vmul.f32 %v645_v8, %v156_v41 }
  0x45   :  { %413 = vpow2.f32 %v322_v33  ;;  %v179_v57 = vmul.f32 %v645_v8, %v175_v42  ;;  %v162_v35 = vadd.f32 %v161_v46, %v157_v44  ;;  %v171_v59 = vmul.f32 %v170_v47, %v610_v0 }
  0x46   :  { %415 = vpow2.f32 %v324_v34  ;;  %v181_v28 = vadd.f32 %v180_v49, %v176_v45  ;;  %v172_v37 = vmul.f32 %v170_v47, %v615_v1  ;;  %v182_v6 = vadd.f32 %v180_v49, %v177_v48 }
  0x47   :  { %417 = vpow2.f32 %v326_v39  ;;  %v173_v38 = vmul.f32 %v170_v47, %v620_v2  ;;  %v183_v7 = vadd.f32 %v180_v49, %v178_v54  ;;  %v163_v61 = vadd.f32 %v161_v46, %v158_v53 }
  0x48   :  { %419 = vpow2.f32 %v328_v40  ;;  %v174_v8 = vmul.f32 %v170_v47, %v625_v3  ;;  %v184_v62 = vadd.f32 %v180_v49, %v179_v57  ;;  %v154_v0 = vmul.f32 %v151_v43, %v620_v2 }
  0x49   :  { %v164_v63 = vadd.f32 %v161_v46, %v159_v4  ;;  %v185_v5 = vadd.f32 %v181_v28, %v171_v59  ;;  %v155_v1 = vmul.f32 %v151_v43, %v625_v3  ;;  %v165_v9 = vadd.f32 %v161_v46, %v160_v56 }
  0x4a   :  { %v186_v11 = vadd.f32 %v182_v6, %v172_v37  ;;  %v166_v12 = vadd.f32 %v162_v35, %v152_v51  ;;  %v187_v13 = vadd.f32 %v183_v7, %v173_v38  ;;  %v167_v15 = vadd.f32 %v163_v61, %v153_v52 }
  0x4b   :  { %v414_v50 = vpop.eup %413  ;;  %v188_v16 = vadd.f32 %v184_v62, %v174_v8  ;;  %v168_v10 = vadd.f32 %v164_v63, %v154_v0  ;;  %v169_v20 = vadd.f32 %v165_v9, %v155_v1 }
  0x4c   :  { %v416_v55 = vpop.eup %415  ;;  %v330_v58 = vadd.f32 1.0, %v414_v50 }
  0x4d   :  { %v418_v27 = vpop.eup %417  ;;  %v331_v29 = vadd.f32 1.0, %v416_v55 }
  0x4e   :  { %v420_v36 = vpop.eup %419  ;;  %v332_v30 = vadd.f32 1.0, %v418_v27  ;;  %421 = vrcp.f32 %v330_v58 }
  0x4f   :  { %v333_v60 = vadd.f32 1.0, %v420_v36  ;;  %423 = vrcp.f32 %v331_v29 }
  0x50   :  { %425 = vrcp.f32 %v332_v30 }
  0x51   :  { %427 = vrcp.f32 %v333_v60 }
  0x54   :  { %v422_v14 = vpop.eup %421 }
  0x55   :  { %v424_v17 = vpop.eup %423  ;;  %v338_v18 = vmul.f32 %v422_v14, %v185_v5 }
  0x56   :  { %v426_v19 = vpop.eup %425  ;;  %v339_v21 = vmul.f32 %v424_v17, %v186_v11 }
  0x57   :  { %v428_v22 = vpop.eup %427  ;;  %v340_v2 = vmul.f32 %v426_v19, %v187_v13  ;;  %v342_v23 = vadd.f32 %v338_v18, %v166_v12 }
  0x58   :  { %v341_v24 = vmul.f32 %v428_v22, %v188_v16  ;;  %v343_v25 = vadd.f32 %v339_v21, %v167_v15 }
  0x59   :  { %v344_v26 = vadd.f32 %v340_v2, %v168_v10  ;;  %v346_v3 = vsub.f32 0.0, %v342_v23 }
  0x5a   :  { %v345_v31 = vadd.f32 %v341_v24, %v169_v20  ;;  %v347_v32 = vsub.f32 0.0, %v343_v25 }
  0x5b   :  { %v348_v33 = vsub.f32 0.0, %v344_v26  ;;  %v350_v34 = vmin.f32 %v346_v3, 30.0 }
  0x5c   :  { %v349_v39 = vsub.f32 0.0, %v345_v31  ;;  %v351_v40 = vmin.f32 %v347_v32, 30.0 }
  0x5d   :  { %v352_v41 = vmin.f32 %v348_v33, 30.0  ;;  %v354_v42 = vmul.f32 1.442695, %v350_v34 }
  0x5e   :  { %v353_v43 = vmin.f32 %v349_v39, 30.0  ;;  %v356_v44 = vmul.f32 1.442695, %v351_v40 }
  0x5f   :  { %429 = vpow2.f32 %v354_v42  ;;  %v358_v45 = vmul.f32 1.442695, %v352_v41 }
  0x60   :  { %431 = vpow2.f32 %v356_v44  ;;  %v360_v46 = vmul.f32 1.442695, %v353_v43 }
  0x61   :  { %433 = vpow2.f32 %v358_v45 }
  0x62   :  { %435 = vpow2.f32 %v360_v46 }
  0x65   :  { %v430_v47 = vpop.eup %429 }
  0x66   :  { %v432_v48 = vpop.eup %431  ;;  %v362_v49 = vadd.f32 1.0, %v430_v47 }
  0x67   :  { %v434_v50 = vpop.eup %433  ;;  %v363_v51 = vadd.f32 1.0, %v432_v48 }
  0x68   :  { %v436_v52 = vpop.eup %435  ;;  %v364_v53 = vadd.f32 1.0, %v434_v50  ;;  %437 = vrcp.f32 %v362_v49 }
  0x69   :  { %v365_v54 = vadd.f32 1.0, %v436_v52  ;;  %439 = vrcp.f32 %v363_v51 }
  0x6a   :  { %441 = vrcp.f32 %v364_v53 }
  0x6b   :  { %443 = vrcp.f32 %v365_v54 }
  0x6e   :  { %v438_v55 = vpop.eup %437 }
  0x6f   :  { %v440_v4 = vpop.eup %439  ;;  %370 = vst [vmem:[%s814_s9] sm:$0xff] %v438_v55 }
  0x70   :  { %v442_v56 = vpop.eup %441  ;;  %371 = vst [vmem:[%s814_s9 + $0x8] sm:$0xff] %v440_v4 }
  0x71   :  { %v444_v57 = vpop.eup %443  ;;  %372 = vst [vmem:[%s814_s9 + $0x10] sm:$0xff] %v442_v56 }
  0x72   :  { %373 = vst [vmem:[%s814_s9 + $0x18] sm:$0xff] %v444_v57 }
  0x73   :  { %378 = vsyncpa [#allocation5], 1 }
  0x74   :  { %379 = vsyncpa [#allocation7], 1 }
  0x75   :  { %380 = vsyncpa [#allocation10], 1 }
  0x76   :  { %381 = vsyncpa [#allocation13], 1 }

</bundles_post_ra>
